<compile_context>
chip_gen: v5e
topology: v5e:2x2
jax: 0.10.0
libtpu: 0.0.40
codegen_flags: <defaults>
</compile_context>

<pallas_src>
import jax
import jax.numpy as jnp
from jax.experimental import pallas as pl
from jax.experimental.pallas import tpu as pltpu


def _round_up(x, m):
    return ((x + m - 1) // m) * m


def _mlp_kernel(idx_ref, s_ref, emb_ref, w1_ref, b1_ref, w2_ref, b2_ref,
                w3_ref, b3_ref, out_ref):
    """Fused 3-layer MLP for one batch tile, embedding gather included.

    t   = one_hot(idxs, B) @ T                (T = emb_table @ W1e, VMEM-resident)
    h1  = relu(states @ W1s + t + b1)
    h2  = relu(h1 @ W2 + b2)
    out = h2 @ W3 + b3
    All matmuls accumulate in f32 on the MXU; bias/ReLU run on the f32 result.
    """
    cd = w1_ref.dtype
    tm = idx_ref.shape[0]
    b_pad = emb_ref.shape[0]

    # In-kernel gather via one-hot matmul (row select on the MXU).
    # Note: an out-of-range idx produces an all-zero one-hot row (zero embedding
    # contribution) instead of raising like nn.Embedding.
    idx = idx_ref[...]                                               # (tm, 1) i32
    onehot = (idx == jax.lax.broadcasted_iota(jnp.int32, (tm, b_pad), 1)).astype(cd)
    t = jnp.dot(onehot, emb_ref[...], preferred_element_type=jnp.float32)

    s = s_ref[...].astype(cd)                                        # (tm, D_in)
    h = jnp.dot(s, w1_ref[...], preferred_element_type=jnp.float32)
    h = jnp.maximum(h + t + b1_ref[...], 0.0)

    h = h.astype(cd)
    h = jnp.dot(h, w2_ref[...], preferred_element_type=jnp.float32)
    h = jnp.maximum(h + b2_ref[...], 0.0)

    h = h.astype(cd)
    out = jnp.dot(h, w3_ref[...], preferred_element_type=jnp.float32)
    out_ref[...] = (out + b3_ref[...]).astype(out_ref.dtype)


def prepare_kernel_params(params, *, input_dim, embedding_dim,
                          compute_dtype=jnp.bfloat16):
    """One-time parameter prep.

    Splits layer 1 into embedding / state columns, folds the embedding table
    through the embedding columns once (T = emb @ W1e, shape (B, H)), zero-pads
    H / D_out / B to lane- and sublane-friendly sizes, and casts matmul operands
    to `compute_dtype` (biases stay f32).  The folded table is later kept
    VMEM-resident inside the kernel, so its size must stay well under VMEM
    (B * H_pad * 2 bytes for bf16 — e.g. 4096 x 256 = 2 MiB, fine on all gens).
    """
    emb = params["emb"]                      # (B, E)
    w1t, b1 = params["w1t"], params["b1"]    # (E+D_in, H), (1, H)
    w2t, b2 = params["w2t"], params["b2"]    # (H, H),      (1, H)
    w3t, b3 = params["w3t"], params["b3"]    # (H, D_out),  (1, D_out)

    e, d_in = embedding_dim, input_dim
    bsz = emb.shape[0]
    h = w1t.shape[1]
    d_out = w3t.shape[1]
    h_pad = _round_up(h, 128)
    d_out_pad = _round_up(d_out, 128)
    b_pad = _round_up(bsz, 16)               # sublane quantum for bf16 contraction

    w1e = w1t[:e, :]                         # embedding columns of layer 1
    w1s = w1t[e:, :]                         # state columns of layer 1 (D_in, H)
    assert w1s.shape[0] == d_in, (w1s.shape, d_in)

    # Fold the embedding table through layer 1 once, in f32.
    emb_proj = jnp.dot(emb, w1e, preferred_element_type=jnp.float32)   # (B, H)

    def pad2(a, rows, cols):
        return jnp.pad(a, ((0, rows - a.shape[0]), (0, cols - a.shape[1])))

    return {
        "emb_proj": pad2(emb_proj, b_pad, h_pad).astype(compute_dtype),
        "w1s": pad2(w1s, d_in, h_pad).astype(compute_dtype),   # K stays = D_in
        "b1": pad2(b1, 1, h_pad).astype(jnp.float32),
        "w2": pad2(w2t, h_pad, h_pad).astype(compute_dtype),
        "b2": pad2(b2, 1, h_pad).astype(jnp.float32),
        "w3": pad2(w3t, h_pad, d_out_pad).astype(compute_dtype),
        "b3": pad2(b3, 1, d_out_pad).astype(jnp.float32),
        "d_in": d_in,
        "d_out": d_out,
        "compute_dtype": compute_dtype,
    }


def idx_aware_mlp_forward(preprocessed_states, idxs, kparams, *, tile_m=1024,
                          min_grid_steps=2, trim_output=True):
    """Forward pass: minimal JAX glue (idx reshape only), then the fused Pallas
    MLP kernel tiled over the batch.  States are streamed raw; the folded
    embedding table and all weights are grid-invariant (VMEM-resident)."""
    emb_proj = kparams["emb_proj"]
    w1s, b1 = kparams["w1s"], kparams["b1"]
    w2, b2 = kparams["w2"], kparams["b2"]
    w3, b3 = kparams["w3"], kparams["b3"]
    d_out = kparams["d_out"]

    n, d_in = preprocessed_states.shape
    assert d_in == kparams["d_in"], (d_in, kparams["d_in"])
    b_pad, h_pad = emb_proj.shape
    d_out_pad = w3.shape[1]

    # Only glue: idxs as an (N, 1) int32 column (tiny stream).
    idx2d = idxs.astype(jnp.int32).reshape(n, 1)

    # Batch tile: big enough to amortize per-step overhead, multiple of the
    # bf16 sublane quantum (16), no bigger than the (16-aligned) batch, and
    # capped so there are >= min_grid_steps grid steps when the batch allows it
    # (keeps v7x's second TensorCore busy).  No explicit batch padding: Pallas
    # masks the partial last block and drops out-of-bounds writes (rows are
    # independent, so garbage pad rows are harmless).
    tm = max(16, min(tile_m, _round_up(n, 16)))
    if min_grid_steps > 1 and n >= min_grid_steps * 16:
        tm = min(tm, max(16, _round_up(pl.cdiv(n, min_grid_steps), 16)))
    grid = (pl.cdiv(n, tm),)

    out = pl.pallas_call(
        _mlp_kernel,
        out_shape=jax.ShapeDtypeStruct((n, d_out_pad), jnp.float32),
        grid=grid,
        in_specs=[
            pl.BlockSpec((tm, 1), lambda i: (i, 0)),              # idxs tile
            pl.BlockSpec((tm, d_in), lambda i: (i, 0)),           # raw states tile
            pl.BlockSpec((b_pad, h_pad), lambda i: (0, 0)),       # folded emb table
            pl.BlockSpec((d_in, h_pad), lambda i: (0, 0)),        # W1 (state part)
            pl.BlockSpec((1, h_pad), lambda i: (0, 0)),           # b1
            pl.BlockSpec((h_pad, h_pad), lambda i: (0, 0)),       # W2
            pl.BlockSpec((1, h_pad), lambda i: (0, 0)),           # b2
            pl.BlockSpec((h_pad, d_out_pad), lambda i: (0, 0)),   # W3
            pl.BlockSpec((1, d_out_pad), lambda i: (0, 0)),       # b3
        ],
        out_specs=pl.BlockSpec((tm, d_out_pad), lambda i: (i, 0)),
        compiler_params=pltpu.CompilerParams(
            dimension_semantics=("parallel",),
            # vmem_limit_bytes only needed for very large tiles (tm >= 4096 f32).
        ),
    )(idx2d, preprocessed_states, emb_proj, w1s, b1, w2, b2, w3, b3)

    if trim_output:
        # Separate XLA pass; consumers that can slice lazily should pass
        # trim_output=False and use the lane-padded (N, 128) slab directly.
        return out[:, :d_out]
    return out


def init_params(key, *, input_dim, output_dim, hidden_dim, embedding_dim,
                batch_size):
    """Deterministic init (PyTorch-like: Linear ~ U(+-1/sqrt(fan_in)),
    Embedding ~ N(0, 1)).  Linear weights stored pre-transposed as (in, out)."""
    keys = jax.random.split(key, 7)
    d_cat = input_dim + embedding_dim

    def linear(kw, kb, fan_in, fan_out):
        bound = 1.0 / jnp.sqrt(fan_in)
        wt = jax.random.uniform(kw, (fan_in, fan_out), jnp.float32, -bound, bound)
        b = jax.random.uniform(kb, (1, fan_out), jnp.float32, -bound, bound)
        return wt, b

    emb = jax.random.normal(keys[0], (batch_size, embedding_dim), jnp.float32)
    w1t, b1 = linear(keys[1], keys[2], d_cat, hidden_dim)
    w2t, b2 = linear(keys[3], keys[4], hidden_dim, hidden_dim)
    w3t, b3 = linear(keys[5], keys[6], hidden_dim, output_dim)
    return {"emb": emb, "w1t": w1t, "b1": b1, "w2t": w2t, "b2": b2,
            "w3t": w3t, "b3": b3}


def reference_forward(preprocessed_states, idxs, params):
    """Pure-JAX reference with the original concat-then-MLP structure."""
    emb = jnp.take(params["emb"], idxs, axis=0)
    x = jnp.concatenate([emb, preprocessed_states], axis=1).astype(jnp.float32)
    h = jnp.maximum(x @ params["w1t"] + params["b1"], 0.0)
    h = jnp.maximum(h @ params["w2t"] + params["b2"], 0.0)
    return h @ params["w3t"] + params["b3"]


if __name__ == "__main__":
    # Full-precision matmuls for the pure-JAX reference / fold.
    jax.config.update("jax_default_matmul_precision", "highest")

    # Small shapes consistent with the module (module defaults are E=128, H=256).
    N = 8
    INPUT_DIM = 16
    EMBED_DIM = 32
    HIDDEN_DIM = 32
    OUTPUT_DIM = 4
    BATCH_SIZE = 16

    key = jax.random.PRNGKey(0)
    k_params, k_x, k_idx, k_x2, k_idx2 = jax.random.split(key, 5)

    params = init_params(
        k_params,
        input_dim=INPUT_DIM,
        output_dim=OUTPUT_DIM,
        hidden_dim=HIDDEN_DIM,
        embedding_dim=EMBED_DIM,
        batch_size=BATCH_SIZE,
    )

    cases = [
        # (states, idxs, tile_m) — single-step grid
        (jax.random.normal(k_x, (N, INPUT_DIM), jnp.float32),
         jax.random.randint(k_idx, (N,), 0, BATCH_SIZE, jnp.int32), 1024),
        # multi-step grid with a partial last block (300 rows, tile_m=128 -> 3 steps)
        (jax.random.normal(k_x2, (300, INPUT_DIM), jnp.float32),
         jax.random.randint(k_idx2, (300,), 0, BATCH_SIZE, jnp.int32), 128),
    ]

    for compute_dtype, tol in [(jnp.float32, 1e-4), (jnp.bfloat16, 5e-2)]:
        kparams = prepare_kernel_params(
            params, input_dim=INPUT_DIM, embedding_dim=EMBED_DIM,
            compute_dtype=compute_dtype)
        for states, idxs, tile_m in cases:
            logits = idx_aware_mlp_forward(states, idxs, kparams, tile_m=tile_m)
            logits = jax.block_until_ready(logits)
            ref = reference_forward(states, idxs, params)
            assert logits.shape == ref.shape, (logits.shape, ref.shape)
            assert jnp.allclose(logits, ref, atol=tol, rtol=tol), (
                f"mismatch vs reference (dtype={compute_dtype}, n={states.shape[0]})")

            # Padded-slab path (skips the post-kernel slice): check shape + values.
            padded = idx_aware_mlp_forward(states, idxs, kparams, tile_m=tile_m,
                                           trim_output=False)
            padded = jax.block_until_ready(padded)
            assert padded.shape == (states.shape[0], 128), padded.shape
            assert jnp.allclose(padded[:, :OUTPUT_DIM], ref, atol=tol, rtol=tol)

    print("KERNEL_OK")
</pallas_src>

<mosaic_0001>
module attributes {stable_mosaic.version = 11 : i64} {
  func.func @_mlp_kernel(%arg0: i32, %arg1: memref<16x1xi32, #tpu.memory_space<vmem>>, %arg2: memref<16x16xf32, #tpu.memory_space<vmem>>, %arg3: memref<16x128xf32, #tpu.memory_space<vmem>>, %arg4: memref<16x128xf32, #tpu.memory_space<vmem>>, %arg5: memref<1x128xf32, #tpu.memory_space<vmem>>, %arg6: memref<128x128xf32, #tpu.memory_space<vmem>>, %arg7: memref<1x128xf32, #tpu.memory_space<vmem>>, %arg8: memref<128x128xf32, #tpu.memory_space<vmem>>, %arg9: memref<1x128xf32, #tpu.memory_space<vmem>>, %arg10: memref<16x128xf32, #tpu.memory_space<vmem>>) attributes {dimension_semantics = [#tpu.dimension_semantics<parallel>], iteration_bounds = array<i64: 1>, scalar_prefetch = 0 : i64, scratch_operands = 0 : i64, tpu.core_type = #tpu.core_type<tc>, window_params = [{transform_indices = @transform_0, window_bounds = array<i64: 16, 1>}, {transform_indices = @transform_1, window_bounds = array<i64: 16, 16>}, {pipeline_mode = #tpu.pipeline_mode<synchronous>, transform_indices = @transform_2, window_bounds = array<i64: 16, 128>}, {pipeline_mode = #tpu.pipeline_mode<synchronous>, transform_indices = @transform_3, window_bounds = array<i64: 16, 128>}, {pipeline_mode = #tpu.pipeline_mode<synchronous>, transform_indices = @transform_4, window_bounds = array<i64: 1, 128>}, {pipeline_mode = #tpu.pipeline_mode<synchronous>, transform_indices = @transform_5, window_bounds = array<i64: 128, 128>}, {pipeline_mode = #tpu.pipeline_mode<synchronous>, transform_indices = @transform_6, window_bounds = array<i64: 1, 128>}, {pipeline_mode = #tpu.pipeline_mode<synchronous>, transform_indices = @transform_7, window_bounds = array<i64: 128, 128>}, {pipeline_mode = #tpu.pipeline_mode<synchronous>, transform_indices = @transform_8, window_bounds = array<i64: 1, 128>}, {transform_indices = @transform_9, window_bounds = array<i64: 16, 128>}]} {
    %c0 = arith.constant 0 : index
    %c0_0 = arith.constant 0 : index
    %0 = vector.load %arg1[%c0, %c0_0] : memref<16x1xi32, #tpu.memory_space<vmem>>, vector<16x1xi32>
    %1 = tpu.iota {dimensions = array<i32: 1>} : vector<16x16xi32>
    %2 = vector.broadcast %0 : vector<16x1xi32> to vector<16x16xi32>
    %3 = arith.cmpi eq, %2, %1 : vector<16x16xi32>
    %4 = arith.extui %3 : vector<16x16xi1> to vector<16x16xi32>
    %5 = arith.sitofp %4 : vector<16x16xi32> to vector<16x16xf32>
    %c0_1 = arith.constant 0 : index
    %c0_2 = arith.constant 0 : index
    %6 = vector.load %arg3[%c0_1, %c0_2] : memref<16x128xf32, #tpu.memory_space<vmem>>, vector<16x128xf32>
    %cst = arith.constant dense<0.000000e+00> : vector<16x128xf32>
    %7 = tpu.matmul %5, %6, %cst {dimension_numbers = #tpu.dot_dimension_numbers<[1], [0], [0], [1], [0, 0, 1, 1], [], []>, precision = #tpu.contract_precision<fp32>} : vector<16x16xf32>, vector<16x128xf32>, vector<16x128xf32> -> vector<16x128xf32>
    %c0_3 = arith.constant 0 : index
    %c0_4 = arith.constant 0 : index
    %8 = vector.load %arg2[%c0_3, %c0_4] : memref<16x16xf32, #tpu.memory_space<vmem>>, vector<16x16xf32>
    %c0_5 = arith.constant 0 : index
    %c0_6 = arith.constant 0 : index
    %9 = vector.load %arg4[%c0_5, %c0_6] : memref<16x128xf32, #tpu.memory_space<vmem>>, vector<16x128xf32>
    %cst_7 = arith.constant dense<0.000000e+00> : vector<16x128xf32>
    %10 = tpu.matmul %8, %9, %cst_7 {dimension_numbers = #tpu.dot_dimension_numbers<[1], [0], [0], [1], [0, 0, 1, 1], [], []>, precision = #tpu.contract_precision<fp32>} : vector<16x16xf32>, vector<16x128xf32>, vector<16x128xf32> -> vector<16x128xf32>
    %11 = arith.addf %10, %7 : vector<16x128xf32>
    %c0_8 = arith.constant 0 : index
    %c0_9 = arith.constant 0 : index
    %12 = vector.load %arg5[%c0_8, %c0_9] : memref<1x128xf32, #tpu.memory_space<vmem>>, vector<1x128xf32>
    %13 = vector.broadcast %12 : vector<1x128xf32> to vector<16x128xf32>
    %14 = arith.addf %11, %13 : vector<16x128xf32>
    %cst_10 = arith.constant 0.000000e+00 : f32
    %15 = vector.broadcast %cst_10 : f32 to vector<16x128xf32>
    %16 = arith.maximumf %14, %15 : vector<16x128xf32>
    %c0_11 = arith.constant 0 : index
    %c0_12 = arith.constant 0 : index
    %17 = vector.load %arg6[%c0_11, %c0_12] : memref<128x128xf32, #tpu.memory_space<vmem>>, vector<128x128xf32>
    %cst_13 = arith.constant dense<0.000000e+00> : vector<16x128xf32>
    %18 = tpu.matmul %16, %17, %cst_13 {dimension_numbers = #tpu.dot_dimension_numbers<[1], [0], [0], [1], [0, 0, 1, 1], [], []>, precision = #tpu.contract_precision<fp32>} : vector<16x128xf32>, vector<128x128xf32>, vector<16x128xf32> -> vector<16x128xf32>
    %c0_14 = arith.constant 0 : index
    %c0_15 = arith.constant 0 : index
    %19 = vector.load %arg7[%c0_14, %c0_15] : memref<1x128xf32, #tpu.memory_space<vmem>>, vector<1x128xf32>
    %20 = vector.broadcast %19 : vector<1x128xf32> to vector<16x128xf32>
    %21 = arith.addf %18, %20 : vector<16x128xf32>
    %cst_16 = arith.constant 0.000000e+00 : f32
    %22 = vector.broadcast %cst_16 : f32 to vector<16x128xf32>
    %23 = arith.maximumf %21, %22 : vector<16x128xf32>
    %c0_17 = arith.constant 0 : index
    %c0_18 = arith.constant 0 : index
    %24 = vector.load %arg8[%c0_17, %c0_18] : memref<128x128xf32, #tpu.memory_space<vmem>>, vector<128x128xf32>
    %cst_19 = arith.constant dense<0.000000e+00> : vector<16x128xf32>
    %25 = tpu.matmul %23, %24, %cst_19 {dimension_numbers = #tpu.dot_dimension_numbers<[1], [0], [0], [1], [0, 0, 1, 1], [], []>, precision = #tpu.contract_precision<fp32>} : vector<16x128xf32>, vector<128x128xf32>, vector<16x128xf32> -> vector<16x128xf32>
    %c0_20 = arith.constant 0 : index
    %c0_21 = arith.constant 0 : index
    %26 = vector.load %arg9[%c0_20, %c0_21] : memref<1x128xf32, #tpu.memory_space<vmem>>, vector<1x128xf32>
    %27 = vector.broadcast %26 : vector<1x128xf32> to vector<16x128xf32>
    %28 = arith.addf %25, %27 : vector<16x128xf32>
    %c0_22 = arith.constant 0 : index
    %c0_23 = arith.constant 0 : index
    %29 = vector.load %arg10[%c0_22, %c0_23] : memref<16x128xf32, #tpu.memory_space<vmem>>, vector<16x128xf32>
    tpu.vector_store %arg10[%c0_22, %c0_23], %28 {strides = array<i32>} : memref<16x128xf32, #tpu.memory_space<vmem>>, vector<16x128xf32>,
    return
  }
  func.func @transform_0(%arg0: i32) -> (i32, i32) {
    %c0_i32 = arith.constant 0 : i32
    %c0_i32_0 = arith.constant 0 : i32
    return %arg0, %c0_i32 : i32, i32
  }
  func.func @transform_1(%arg0: i32) -> (i32, i32) {
    %c0_i32 = arith.constant 0 : i32
    %c0_i32_0 = arith.constant 0 : i32
    return %arg0, %c0_i32 : i32, i32
  }
  func.func @transform_2(%arg0: i32) -> (i32, i32) {
    %c0_i32 = arith.constant 0 : i32
    %c0_i32_0 = arith.constant 0 : i32
    %c0_i32_1 = arith.constant 0 : i32
    return %c0_i32, %c0_i32_0 : i32, i32
  }
  func.func @transform_3(%arg0: i32) -> (i32, i32) {
    %c0_i32 = arith.constant 0 : i32
    %c0_i32_0 = arith.constant 0 : i32
    %c0_i32_1 = arith.constant 0 : i32
    return %c0_i32, %c0_i32_0 : i32, i32
  }
  func.func @transform_4(%arg0: i32) -> (i32, i32) {
    %c0_i32 = arith.constant 0 : i32
    %c0_i32_0 = arith.constant 0 : i32
    %c0_i32_1 = arith.constant 0 : i32
    return %c0_i32, %c0_i32_0 : i32, i32
  }
  func.func @transform_5(%arg0: i32) -> (i32, i32) {
    %c0_i32 = arith.constant 0 : i32
    %c0_i32_0 = arith.constant 0 : i32
    %c0_i32_1 = arith.constant 0 : i32
    return %c0_i32, %c0_i32_0 : i32, i32
  }
  func.func @transform_6(%arg0: i32) -> (i32, i32) {
    %c0_i32 = arith.constant 0 : i32
    %c0_i32_0 = arith.constant 0 : i32
    %c0_i32_1 = arith.constant 0 : i32
    return %c0_i32, %c0_i32_0 : i32, i32
  }
  func.func @transform_7(%arg0: i32) -> (i32, i32) {
    %c0_i32 = arith.constant 0 : i32
    %c0_i32_0 = arith.constant 0 : i32
    %c0_i32_1 = arith.constant 0 : i32
    return %c0_i32, %c0_i32_0 : i32, i32
  }
  func.func @transform_8(%arg0: i32) -> (i32, i32) {
    %c0_i32 = arith.constant 0 : i32
    %c0_i32_0 = arith.constant 0 : i32
    %c0_i32_1 = arith.constant 0 : i32
    return %c0_i32, %c0_i32_0 : i32, i32
  }
  func.func @transform_9(%arg0: i32) -> (i32, i32) {
    %c0_i32 = arith.constant 0 : i32
    %c0_i32_0 = arith.constant 0 : i32
    return %arg0, %c0_i32 : i32, i32
  }
}

</mosaic_0001>

<bundles_post_ra>
// kernel: tpu_custom_call.1
= control target key start
LH: loop header
LB: loop body
LE: loop exit
PB: predicated region body
PF: predicated region fallthrough
CT: control target
= control target key end

     0   :  { %14 = vsyncpa [#allocation3], 0  ;;  %s2038_s0 = inlined_call_operand.vmem [shape: s32[8,1], index: 0, kind: input, shape index: {}]   ;;  %s2039_s1 = inlined_call_operand.vmem [shape: f32[8,16], index: 1, kind: input, shape index: {}]   ;;  %s2040_s2 = inlined_call_operand.hbm [shape: f32[16,128], index: 2, kind: input, shape index: {}]   ;;  %s2041_s3 = inlined_call_operand.hbm [shape: f32[16,128], index: 3, kind: input, shape index: {}]   ;;  %s2042_s4 = inlined_call_operand.vmem [shape: f32[1,128], index: 4, kind: input, shape index: {}]   ;;  %s2043_s5 = inlined_call_operand.hbm [shape: f32[128,128], index: 5, kind: input, shape index: {}]   ;;  %s2044_s6 = inlined_call_operand.vmem [shape: f32[1,128], index: 6, kind: input, shape index: {}]   ;;  %s2045_s7 = inlined_call_operand.hbm [shape: f32[128,128], index: 7, kind: input, shape index: {}]   ;;  %s2046_s8 = inlined_call_operand.vmem [shape: f32[1,128], index: 8, kind: input, shape index: {}]   ;;  %s2047_s9 = inlined_call_operand.hbm [shape: f32[8,128], index: 9, kind: output, shape index: {}]  }
   0x1   :  { %15 = vsyncpa [#allocation6], 0 }
   0x2   :  { %16 = vsyncpa [#allocation9], 0 }
   0x3   :  { %17 = vsyncpa [#allocation4], 0  ;;  %s39_s11 = sshll.u32 %s2041_s3, 4  ;;  %s1477_s12 = smov [#allocation5]   ;;  %s40_s11 = int_to_ptr.hbm [resolvable:$true] %s39_s11 }
   0x4   :  { %s41_s13 = sshll.u32 %s1477_s12, 4  ;;  %s26_s16 = sshll.u32 %s2040_s2, 4  ;;  %s42_s13 = int_to_ptr.vmem [resolvable:$true] %s41_s13  ;;  %s27_s16 = int_to_ptr.hbm [resolvable:$true] %s26_s16 }
   0x5   :  { %s1478_s17 = smov 128   ;;  %s1479_s18 = smov 8  }
   0x6   :  { %47 = dma.hbm_to_vmem [thread:$0]  %s40_s11, 256, %s42_s13, [#allocation6], %s1478_s17, %s1478_s17, %s1479_s18  }
   0x7   :  { %s1480_s19 = smov [#allocation2]   ;;  %s54_s3 = sshll.u32 %s2043_s5, 4  ;;  %s55_s3 = int_to_ptr.hbm [resolvable:$true] %s54_s3 }
   0x8   :  { %s28_s20 = sshll.u32 %s1480_s19, 4  ;;  %s69_s24 = sshll.u32 %s2045_s7, 4  ;;  %s29_s20 = int_to_ptr.vmem [resolvable:$true] %s28_s20  ;;  %s70_s24 = int_to_ptr.hbm [resolvable:$true] %s69_s24 }
   0x9   :  { %34 = dma.hbm_to_vmem [thread:$0]  %s27_s16, 256, %s29_s20, [#allocation3], %s1478_s17, %s1478_s17, %s1479_s18  }
   0xa   :  { %s1481_s25 = smov [#allocation7]   ;;  %s1482_s27 = smov [#allocation8]  }
   0xb   :  { %s56_s26 = sshll.u32 %s1481_s25, 4  ;;  %s71_s5 = sshll.u32 %s1482_s27, 4  ;;  %s57_s26 = int_to_ptr.vmem [resolvable:$true] %s56_s26  ;;  %s72_s5 = int_to_ptr.vmem [resolvable:$true] %s71_s5 }
   0xc   :  { %62 = dma.hbm_to_vmem [thread:$0]  %s55_s3, 2048, %s57_s26, [#allocation6], %s1478_s17, %s1478_s17, %s1479_s18  }
   0xd   :  { %77 = dma.hbm_to_vmem [thread:$0]  %s70_s24, 2048, %s72_s5, [#allocation9], %s1478_s17, %s1478_s17, %s1479_s18  }
   0xe   :  { %1469 = dma.done.wait [#allocation3], 256  }
   0xf   :  { %1470 = vsyncadd [#allocation3], 4294967040 }
  0x10   :  { %1471 = dma.done.wait [#allocation6], 2304  }
  0x11   :  { %1472 = vsyncadd [#allocation6], 4294964992 }
  0x12   :  { %1473 = dma.done.wait [#allocation9], 2048  }
  0x13   :  { %1474 = vsyncadd [#allocation9], 4294965248  ;;  %v1483_v0 = vmov 0   ;;  %v96_v1 = vld [vmem:[%s2038_s0] sm:$0xff]  ;;  %v113_v2 = vld [vmem:[#allocation2 + $0x8] sm:$0xff]  ;;  %v98_v26 = vlaneseq  ;;  %vm114_vm0 = vcmask 130048  }
  0x14   :  { %1345 = vset.pattern.permute.xlu0 %v1483_v0  ;;  %v135_v3 = vand.u32 4294901760, %v113_v2  ;;  %v97_v6 = vld [vmem:[%s2038_s0 + $0x8] sm:$0xff]  ;;  %v112_v9 = vld [vmem:[#allocation2] sm:$0xff]  ;;  %v314_v15 = vld [vmem:[#allocation5 + $0x8] sm:$0xff]  ;;  %v1484_v32 = vmov 0.0  }
  0x15   :  { %101 = vperm.xlu0 %1345, %v96_v1   ;;  %v137_v10 = vand.u32 4294901760, %v112_v9  ;;  %v335_v16 = vand.u32 4294901760, %v314_v15  ;;  %v313_v19 = vld [vmem:[#allocation5] sm:$0xff]  ;;  %v311_v28 = vld [vmem:[%s2039_s1] sm:$0xff]  ;;  %v99_v29 = vand.u32 127, %v98_v26  ;;  %v312_v37 = vld [vmem:[%s2039_s1 + $0x8] sm:$0xff] }
  0x16   :  { %v171_v4 = vsub.f32 %v113_v2, %v135_v3  ;;  %237 = vmatpush.msra.mxu3 %v135_v3  ;;  %136 = vmatpush.msra.mxu0 %v135_v3  ;;  %v337_v21 = vand.u32 4294901760, %v313_v19  ;;  %v316_v30 = vsel %vm114_vm0, %v311_v28, 0  ;;  %v319_v40 = vsel %vm114_vm0, %v312_v37, 0  ;;  %v534_v58 = vld [vmem:[#allocation7 + $0x78] sm:$0xff]  ;;  %v533_v60 = vld [vmem:[#allocation7 + $0x70] sm:$0xff]  ;;  %v532_v63 = vld [vmem:[#allocation7 + $0x68] sm:$0xff] }
  0x17   :  { %v177_v11 = vsub.f32 %v112_v9, %v137_v10  ;;  %v371_v17 = vsub.f32 %v314_v15, %v335_v16  ;;  %v339_v34 = vand.u32 4294901760, %v316_v30  ;;  %v347_v46 = vand.u32 4294901760, %v319_v40  ;;  %v527_v26 = vld [vmem:[#allocation7 + $0x40] sm:$0xff] }
  0x18   :  { %v172_v5 = vand.u32 4294901760, %v171_v4  ;;  %207 = vmatpush.msra.mxu2 %v171_v4  ;;  %239 = vmatpush.msra.mxu3 %v137_v10  ;;  %v377_v23 = vsub.f32 %v313_v19, %v337_v21  ;;  %v1582_v59 = vand.u32 4294901760, %v534_v58  ;;  %v1587_v62 = vand.u32 4294901760, %v533_v60 }
  0x19   :  { %138 = vmatpush.msra.mxu0 %v137_v10  ;;  %v178_v12 = vand.u32 4294901760, %v177_v11  ;;  %v372_v18 = vand.u32 4294901760, %v371_v17  ;;  %v340_v39 = vsub.f32 %v316_v30, %v339_v34  ;;  %v348_v51 = vsub.f32 %v319_v40, %v347_v46 }
  0x1a   :  { %v173_v7 = vsub.f32 %v171_v4, %v172_v5  ;;  %210 = vmatpush.msra.mxu2 %v177_v11  ;;  %v378_v24 = vand.u32 4294901760, %v377_v23  ;;  %v1585_v61 = vsub.f32 %v534_v58, %v1582_v59  ;;  %v1593_v1 = vsub.f32 %v533_v60, %v1587_v62 }
  0x1b   :  { %270 = vmatpush.msrb.mxu0 %v172_v5  ;;  %v179_v13 = vsub.f32 %v177_v11, %v178_v12  ;;  %v373_v20 = vsub.f32 %v371_v17, %v372_v18  ;;  %v341_v45 = vand.u32 4294901760, %v340_v39  ;;  %v349_v55 = vand.u32 4294901760, %v348_v51 }
  0x1c   :  { %v174_v8 = vand.u32 4294901760, %v173_v7  ;;  %336 = vmatpush.msrb.mxu2 %v335_v16  ;;  %v379_v25 = vsub.f32 %v377_v23, %v378_v24  ;;  %v590_v0 = vand.u32 4294901760, %v1585_v61  ;;  %v1595_v2 = vand.u32 4294901760, %v532_v63 }
  0x1d   :  { %104 = vperm.xlu0 %1345, %v97_v6   ;;  %274 = vmatpush.msrb.mxu0 %v178_v12  ;;  %v180_v14 = vand.u32 4294901760, %v179_v13  ;;  %v374_v22 = vand.u32 4294901760, %v373_v20  ;;  %v342_v50 = vsub.f32 %v340_v39, %v341_v45  ;;  %v350_v56 = vsub.f32 %v348_v51, %v349_v55  ;;  %v528_v20 = vld [vmem:[#allocation7 + $0x48] sm:$0xff] }
  0x1e   :  { %175 = vmatpush.msra.mxu1 %v174_v8  ;;  %338 = vmatpush.msrb.mxu2 %v337_v21  ;;  %v380_v27 = vand.u32 4294901760, %v379_v25  ;;  %v591_v4 = vsub.f32 %v1585_v61, %v590_v0  ;;  %v596_v5 = vand.u32 4294901760, %v1593_v1  ;;  %v1605_v6 = vsub.f32 %v532_v63, %v1595_v2  ;;  %v530_v8 = vld [vmem:[#allocation7 + $0x58] sm:$0xff] }
  0x1f   :  { %375 = vmatpush.msrb.mxu3 %v374_v22  ;;  %v343_v54 = vand.u32 4294901760, %v342_v50  ;;  %v351_v57 = vand.u32 4294901760, %v350_v56  ;;  %v1621_v13 = vand.u32 4294901760, %v530_v8  ;;  %v1651_v30 = vand.u32 4294901760, %v527_v26  ;;  %v523_v50 = vld [vmem:[#allocation7 + $0x20] sm:$0xff]  ;;  %v522_v56 = vld [vmem:[#allocation7 + $0x18] sm:$0xff] }
  0x20   :  { %181 = vmatpush.msra.mxu1 %v180_v14  ;;  %v592_v9 = vand.u32 4294901760, %v591_v4  ;;  %v602_v11 = vand.u32 4294901760, %v1605_v6  ;;  %v529_v14 = vld [vmem:[#allocation7 + $0x50] sm:$0xff]  ;;  %v1710_v63 = vand.u32 4294901760, %v522_v56 }
  0x21   :  { %381 = vmatpush.msrb.mxu3 %v380_v27  ;;  %v1632_v19 = vsub.f32 %v530_v8, %v1621_v13  ;;  %v521_v4 = vld [vmem:[#allocation7 + $0x10] sm:$0xff] }
  0x22   :  { %299 = vmatpush.msrb.mxu1 %v135_v3  ;;  %v531_v3 = vld [vmem:[#allocation7 + $0x60] sm:$0xff] }
  0x23   :  { %v1607_v7 = vand.u32 4294901760, %v531_v3  ;;  %v614_v25 = vand.u32 4294901760, %v1632_v19 }
  0x24   :  { %301 = vmatpush.msrb.mxu1 %v137_v10  ;;  %v597_v10 = vsub.f32 %v1593_v1, %v596_v5 }
  0x25   :  { %v1617_v12 = vsub.f32 %v531_v3, %v1607_v7 }
  0x26   :  { %v598_v15 = vand.u32 4294901760, %v597_v10  ;;  %v1723_v10 = vsub.f32 %v522_v56, %v1710_v63 }
  0x87   :  { %v102_v31 = vpop.permute.xlu0 %101 }
  0x88   :  { %vm106_vm1 = vcmp.eq.s32.totalorder %v102_v31, %v99_v29  ;;  %v615_v31 = vsub.f32 %v1632_v19, %v614_v25 }
  0x89   :  { %v1328_v33 = vsel %vm106_vm1, 1.0, %v1484_v32 }
  0x8a   :  { %1330 = vmatmul.msk.f32.vlgmr.msra.gmra.mxu1 %vm114_vm0, %v1328_v33  ;;  %v116_v35 = vsel %vm114_vm0, %v1328_v33, 0  ;;  %v616_v37 = vand.u32 4294901760, %v615_v31  ;;  %v519_v31 = vld [vmem:[#allocation7] sm:$0xff] }
  0x8b   :  { %v140_v36 = vsub.f32 %v116_v35, %v116_v35  ;;  %437 = vmatpush.msra.mxu1 %v335_v16  ;;  %v1664_v35 = vsub.f32 %v527_v26, %v1651_v30 }
  0x8d   :  { %213 = vmatmul.f32.vlgmr.msra.gmra.mxu2 %v140_v36  ;;  %v141_v38 = vand.u32 4294901760, %v140_v36  ;;  %439 = vmatpush.msra.mxu1 %v337_v21 }
  0x8e   :  { %470 = vmatpush.msra.mxu2 %v372_v18  ;;  %v1628_v18 = vand.u32 4294901760, %v529_v14 }
  0x8f   :  { %243 = vmatmul.f32.vlgmr.msra.gmra.mxu3 %v141_v38  ;;  %v105_v41 = vpop.permute.xlu0 %104  ;;  %v142_v42 = vsub.f32 %v140_v36, %v141_v38  ;;  %v525_v38 = vld [vmem:[#allocation7 + $0x30] sm:$0xff] }
  0x90   :  { %vm107_vm2 = vcmp.eq.s32.totalorder %v105_v41, %v99_v29  ;;  %499 = vmatpush.msra.mxu3 %v335_v16  ;;  %474 = vmatpush.msra.mxu2 %v378_v24  ;;  %v603_v16 = vsub.f32 %v1605_v6, %v602_v11  ;;  %v1642_v24 = vand.u32 4294901760, %v528_v20  ;;  %v632_v41 = vand.u32 4294901760, %v1664_v35 }
  0x91   :  { %v1329_v43 = vsel %vm107_vm2, 1.0, %v1484_v32  ;;  %v143_v44 = vand.u32 4294901760, %v142_v42  ;;  %v526_v32 = vld [vmem:[#allocation7 + $0x38] sm:$0xff] }
  0x92   :  { %1331 = vmatmul.msk.f32.gmra.mxu1 %vm114_vm0, %v1329_v43  ;;  %v119_v47 = vsel %vm114_vm0, %v1329_v43, 0  ;;  %501 = vmatpush.msra.mxu3 %v337_v21  ;;  %v604_v21 = vand.u32 4294901760, %v603_v16  ;;  %v1649_v29 = vsub.f32 %v528_v20, %v1642_v24  ;;  %v1666_v36 = vand.u32 4294901760, %v526_v32  ;;  %v520_v16 = vld [vmem:[#allocation7 + $0x8] sm:$0xff] }
  0x93   :  { %144 = vmatmul.f32.vlgmr.msra.gmra.mxu0 %v143_v44  ;;  %v148_v48 = vsub.f32 %v119_v47, %v119_v47  ;;  %v524_v44 = vld [vmem:[#allocation7 + $0x28] sm:$0xff] }
  0x94   :  { %407 = vmatpush.msra.mxu0 %v371_v17  ;;  %v608_v17 = vand.u32 4294901760, %v1617_v12  ;;  %v1676_v42 = vsub.f32 %v526_v32, %v1666_v36 }
  0x95   :  { %218 = vmatmul.f32.gmra.mxu2 %v148_v48  ;;  %v149_v49 = vand.u32 4294901760, %v148_v48 }
  0x96   :  { %410 = vmatpush.msra.mxu0 %v377_v23  ;;  %v609_v22 = vsub.f32 %v1617_v12, %v608_v17  ;;  %v1640_v23 = vsub.f32 %v529_v14, %v1628_v18  ;;  %v638_v47 = vand.u32 4294901760, %v1676_v42  ;;  %v1725_v14 = vand.u32 4294901760, %v521_v4 }
  0x97   :  { %249 = vmatmul.f32.gmra.mxu3 %v149_v49  ;;  %v150_v52 = vsub.f32 %v148_v48, %v149_v49  ;;  %v1686_v48 = vand.u32 4294901760, %v524_v44 }
  0x98   :  { %v610_v27 = vand.u32 4294901760, %v609_v22  ;;  %v620_v28 = vand.u32 4294901760, %v1640_v23  ;;  %v662_v22 = vand.u32 4294901760, %v1723_v10  ;;  %v1735_v26 = vsub.f32 %v521_v4, %v1725_v14 }
  0x99   :  { %v151_v53 = vand.u32 4294901760, %v150_v52  ;;  %v639_v52 = vsub.f32 %v1676_v42, %v638_v47 }
  0x9a   :  { %1334 = vmatmul.msk.f32.vlgmr.msrb.gmra.mxu1 %vm114_vm0, %v1328_v33 }
  0x9b   :  { %152 = vmatmul.f32.gmra.mxu0 %v151_v53  ;;  %593 = vmatpush.msrb.mxu1 %v592_v9  ;;  %v1698_v53 = vsub.f32 %v524_v44, %v1686_v48 }
  0x9d   :  { %344 = vmatmul.f32.vlgmr.msrb.gmra.mxu2 %v343_v54  ;;  %599 = vmatpush.msrb.mxu1 %v598_v15  ;;  %v1700_v54 = vand.u32 4294901760, %v523_v50  ;;  %v650_v58 = vand.u32 4294901760, %v1698_v53 }
  0x9e   :  { %695 = vmatpush.msrb.mxu2 %v1585_v61 }
  0x9f   :  { %383 = vmatmul.f32.vlgmr.msrb.gmra.mxu3 %v339_v34  ;;  %605 = vmatpush.msrb.mxu1 %v604_v21  ;;  %v1708_v60 = vsub.f32 %v523_v50, %v1700_v54  ;;  %v651_v8 = vsub.f32 %v1698_v53, %v650_v58 }
  0xa0   :  { %753 = vmatpush.msrb.mxu3 %v1582_v59  ;;  %698 = vmatpush.msrb.mxu2 %v1593_v1 }
  0xa1   :  { %611 = vmatpush.msrb.mxu1 %v610_v27  ;;  %v656_v9 = vand.u32 4294901760, %v1708_v60  ;;  %v652_v20 = vand.u32 4294901760, %v651_v8  ;;  %v1739_v27 = vand.u32 4294901760, %v520_v16 }
  0xa2   :  { %1335 = vmatmul.msk.f32.gmra.mxu1 %vm114_vm0, %v1329_v43  ;;  %755 = vmatpush.msrb.mxu3 %v1587_v62 }
  0xa3   :  { %1332 = vmatmul.msk.f32.vlgmr.msrb.gmra.mxu0 %vm114_vm0, %v1328_v33  ;;  %701 = vmatpush.msrb.mxu2 %v1605_v6  ;;  %v621_v33 = vsub.f32 %v1640_v23, %v620_v28  ;;  %v657_v21 = vsub.f32 %v1708_v60, %v656_v9 }
  0xa4   :  { %540 = vmatpush.msrb.mxu0 %v1582_v59  ;;  %757 = vmatpush.msrb.mxu3 %v1595_v2 }
  0xa5   :  { %352 = vmatmul.f32.gmra.mxu2 %v351_v57  ;;  %617 = vmatpush.msrb.mxu1 %v616_v37  ;;  %v640_v57 = vand.u32 4294901760, %v639_v52  ;;  %v658_v32 = vand.u32 4294901760, %v657_v21  ;;  %v668_v37 = vand.u32 4294901760, %v1735_v26 }
  0xa6   :  { %542 = vmatpush.msrb.mxu0 %v1587_v62  ;;  %759 = vmatpush.msrb.mxu3 %v1607_v7 }
  0xa7   :  { %387 = vmatmul.f32.gmra.mxu3 %v347_v46  ;;  %704 = vmatpush.msrb.mxu2 %v1617_v12  ;;  %v669_v44 = vsub.f32 %v1735_v26, %v668_v37 }
  0xa8   :  { %544 = vmatpush.msrb.mxu0 %v1595_v2  ;;  %761 = vmatpush.msrb.mxu3 %v1621_v13 }
  0xa9   :  { %707 = vmatpush.msrb.mxu2 %v1632_v19 }
  0xaa   :  { %443 = vmatmul.f32.vlgmr.msra.gmra.mxu1 %v341_v45  ;;  %546 = vmatpush.msrb.mxu0 %v1607_v7 }
  0xab   :  { %1333 = vmatmul.msk.f32.gmra.mxu0 %vm114_vm0, %v1329_v43  ;;  %763 = vmatpush.msrb.mxu3 %v1628_v18  ;;  %v1679_v43 = vand.u32 4294901760, %v525_v38 }
  0xac   :  { %548 = vmatpush.msrb.mxu0 %v1621_v13  ;;  %710 = vmatpush.msrb.mxu2 %v1640_v23 }
  0xad   :  { %476 = vmatmul.f32.vlgmr.msra.gmra.mxu2 %v339_v34  ;;  %765 = vmatpush.msrb.mxu3 %v1642_v24  ;;  %v1691_v49 = vsub.f32 %v525_v38, %v1679_v43  ;;  %v1746_v38 = vand.u32 4294901760, %v519_v31 }
  0xae   :  { %550 = vmatpush.msrb.mxu0 %v1628_v18  ;;  %713 = vmatpush.msrb.mxu2 %v1649_v29 }
  0xaf   :  { %503 = vmatmul.f32.vlgmr.msra.gmra.mxu3 %v339_v34  ;;  %v626_v34 = vand.u32 4294901760, %v1649_v29 }
  0xb0   :  { %552 = vmatpush.msrb.mxu0 %v1642_v24  ;;  %767 = vmatpush.msrb.mxu3 %v1651_v30 }
  0xb1   :  { %v627_v40 = vsub.f32 %v1649_v29, %v626_v34  ;;  %716 = vmatpush.msrb.mxu2 %v1664_v35 }
  0xb2   :  { %449 = vmatmul.f32.gmra.mxu1 %v349_v55  ;;  %554 = vmatpush.msrb.mxu0 %v1651_v30  ;;  %v644_v55 = vand.u32 4294901760, %v1691_v49 }
  0xb3   :  { %413 = vmatmul.f32.vlgmr.msra.gmra.mxu0 %v340_v39  ;;  %v622_v39 = vand.u32 4294901760, %v621_v33  ;;  %v628_v45 = vand.u32 4294901760, %v627_v40  ;;  %769 = vmatpush.msrb.mxu3 %v1666_v36  ;;  %v663_v33 = vsub.f32 %v1723_v10, %v662_v22 }
  0xb4   :  { %556 = vmatpush.msrb.mxu0 %v1666_v36  ;;  %719 = vmatpush.msrb.mxu2 %v1676_v42  ;;  %v645_v3 = vsub.f32 %v1691_v49, %v644_v55 }
  0xb5   :  { %480 = vmatmul.f32.gmra.mxu2 %v347_v46  ;;  %623 = vmatpush.msrb.mxu1 %v622_v39  ;;  %v1751_v39 = vsub.f32 %v520_v16, %v1739_v27  ;;  %v664_v40 = vand.u32 4294901760, %v663_v33 }
  0xb6   :  { %558 = vmatpush.msrb.mxu0 %v1679_v43  ;;  %771 = vmatpush.msrb.mxu3 %v1679_v43  ;;  %v646_v15 = vand.u32 4294901760, %v645_v3 }
  0xb7   :  { %507 = vmatmul.f32.gmra.mxu3 %v347_v46  ;;  %v633_v46 = vsub.f32 %v1664_v35, %v632_v41  ;;  %629 = vmatpush.msrb.mxu1 %v628_v45  ;;  %v1758_v45 = vsub.f32 %v519_v31, %v1746_v38  ;;  %v674_v50 = vand.u32 4294901760, %v1751_v39 }
  0xb8   :  { %560 = vmatpush.msrb.mxu0 %v1686_v48  ;;  %722 = vmatpush.msrb.mxu2 %v1691_v49 }
  0xb9   :  { %773 = vmatpush.msrb.mxu3 %v1686_v48  ;;  %v680_v52 = vand.u32 4294901760, %v1758_v45  ;;  %v675_v56 = vsub.f32 %v1751_v39, %v674_v50 }
  0xba   :  { %562 = vmatpush.msrb.mxu0 %v1700_v54  ;;  %725 = vmatpush.msrb.mxu2 %v1698_v53 }
  0xbb   :  { %418 = vmatmul.f32.gmra.mxu0 %v348_v51  ;;  %v634_v51 = vand.u32 4294901760, %v633_v46  ;;  %775 = vmatpush.msrb.mxu3 %v1700_v54  ;;  %v676_v3 = vand.u32 4294901760, %v675_v56 }
  0xbc   :  { %564 = vmatpush.msrb.mxu0 %v1710_v63  ;;  %728 = vmatpush.msrb.mxu2 %v1708_v60 }
  0xbd   :  { %635 = vmatpush.msrb.mxu1 %v634_v51  ;;  %777 = vmatpush.msrb.mxu3 %v1710_v63  ;;  %v670_v51 = vand.u32 4294901760, %v669_v44 }
  0xbe   :  { %566 = vmatpush.msrb.mxu0 %v1725_v14  ;;  %731 = vmatpush.msrb.mxu2 %v1723_v10 }
  0xbf   :  { %641 = vmatpush.msrb.mxu1 %v640_v57  ;;  %779 = vmatpush.msrb.mxu3 %v1725_v14  ;;  %v681_v57 = vsub.f32 %v1758_v45, %v680_v52 }
  0xc0   :  { %568 = vmatpush.msrb.mxu0 %v1739_v27  ;;  %734 = vmatpush.msrb.mxu2 %v1735_v26 }
  0xc1   :  { %647 = vmatpush.msrb.mxu1 %v646_v15  ;;  %781 = vmatpush.msrb.mxu3 %v1739_v27  ;;  %v682_v4 = vand.u32 4294901760, %v681_v57 }
  0xc2   :  { %570 = vmatpush.msrb.mxu0 %v1746_v38  ;;  %737 = vmatpush.msrb.mxu2 %v1751_v39  ;;  %v926_v39 = vld [vmem:[#allocation8 + $0x68] sm:$0xff] }
  0xc3   :  { %653 = vmatpush.msrb.mxu1 %v652_v20  ;;  %783 = vmatpush.msrb.mxu3 %v1746_v38 }
  0xc4   :  { %800 = vmatpush.msra.mxu0 %v590_v0  ;;  %740 = vmatpush.msrb.mxu2 %v1758_v45  ;;  %v1825_v45 = vand.u32 4294901760, %v926_v39 }
  0xc5   :  { %659 = vmatpush.msrb.mxu1 %v658_v32 }
  0xc6   :  { %804 = vmatpush.msra.mxu0 %v596_v5 }
  0xc7   :  { %665 = vmatpush.msrb.mxu1 %v664_v40 }
  0xc8   :  { %808 = vmatpush.msra.mxu0 %v602_v11 }
  0xc9   :  { %671 = vmatpush.msrb.mxu1 %v670_v51  ;;  %v923_v51 = vld [vmem:[#allocation8 + $0x50] sm:$0xff] }
  0xca   :  { %812 = vmatpush.msra.mxu0 %v608_v17 }
  0xcb   :  { %677 = vmatpush.msrb.mxu1 %v676_v3 }
  0xcc   :  { %816 = vmatpush.msra.mxu0 %v614_v25 }
  0xcd   :  { %683 = vmatpush.msrb.mxu1 %v682_v4 }
  0xce   :  { %820 = vmatpush.msra.mxu0 %v620_v28 }
  0xcf   :  { %871 = vmatpush.msra.mxu1 %v1582_v59 }
  0xd0   :  { %824 = vmatpush.msra.mxu0 %v626_v34 }
  0xd1   :  { %873 = vmatpush.msra.mxu1 %v1587_v62 }
  0xd2   :  { %828 = vmatpush.msra.mxu0 %v632_v41 }
  0xd3   :  { %875 = vmatpush.msra.mxu1 %v1595_v2 }
  0xd4   :  { %832 = vmatpush.msra.mxu0 %v638_v47 }
  0xd5   :  { %877 = vmatpush.msra.mxu1 %v1607_v7 }
  0xd6   :  { %836 = vmatpush.msra.mxu0 %v644_v55 }
  0xd7   :  { %879 = vmatpush.msra.mxu1 %v1621_v13 }
  0xd8   :  { %840 = vmatpush.msra.mxu0 %v650_v58 }
  0xd9   :  { %881 = vmatpush.msra.mxu1 %v1628_v18 }
  0xda   :  { %844 = vmatpush.msra.mxu0 %v656_v9 }
  0xdb   :  { %883 = vmatpush.msra.mxu1 %v1642_v24 }
  0xdc   :  { %848 = vmatpush.msra.mxu0 %v662_v22 }
  0xdd   :  { %885 = vmatpush.msra.mxu1 %v1651_v30 }
  0xde   :  { %852 = vmatpush.msra.mxu0 %v668_v37  ;;  %v928_v37 = vld [vmem:[#allocation8 + $0x78] sm:$0xff] }
  0xdf   :  { %887 = vmatpush.msra.mxu1 %v1666_v36  ;;  %v1821_v40 = vand.u32 4294901760, %v928_v37 }
  0xe0   :  { %856 = vmatpush.msra.mxu0 %v674_v50  ;;  %v924_v50 = vld [vmem:[#allocation8 + $0x58] sm:$0xff] }
  0xe1   :  { %889 = vmatpush.msra.mxu1 %v1679_v43  ;;  %v1829_v3 = vand.u32 4294901760, %v924_v50  ;;  %v1832_v4 = vsub.f32 %v928_v37, %v1821_v40  ;;  %934 = vmatpush.msra.mxu2 %v1821_v40 }
  0xe2   :  { %860 = vmatpush.msra.mxu0 %v680_v52 }
  0xe3   :  { %891 = vmatpush.msra.mxu1 %v1686_v48 }
  0xe5   :  { %893 = vmatpush.msra.mxu1 %v1700_v54 }
  0xe7   :  { %895 = vmatpush.msra.mxu1 %v1710_v63  ;;  %v1346_v63 = vld [vmem:[%s2042_s4] ss:$0 sm:$0xff] }
  0xe9   :  { %897 = vmatpush.msra.mxu1 %v1725_v14 }
  0xeb   :  { %899 = vmatpush.msra.mxu1 %v1739_v27 }
  0xed   :  { %901 = vmatpush.msra.mxu1 %v1746_v38  ;;  %v927_v38 = vld [vmem:[#allocation8 + $0x70] sm:$0xff] }
  0xee   :  { %v1823_v44 = vand.u32 4294901760, %v927_v38 }
  0xf0   :  { %936 = vmatpush.msra.mxu2 %v1823_v44 }
  0xf2   :  { %938 = vmatpush.msra.mxu2 %v1825_v45 }
 0x107   :  { %v184_v46 = vpop.f32.mrf.mxu1 }
 0x10f   :  { %v188_v1 = vpop.f32.mrf.mxu1 }
 0x110   :  { %v145_v61 = vpop.f32.mrf.mxu0  ;;  %v214_v0 = vpop.f32.mrf.mxu2 }
 0x111   :  { %v185_v11 = vadd.f32 %v184_v46, %v145_v61  ;;  %v925_v46 = vld [vmem:[#allocation8 + $0x60] sm:$0xff]  ;;  %v1835_v61 = vsub.f32 %v927_v38, %v1823_v44 }
 0x112   :  { %v244_v5 = vpop.f32.mrf.mxu3  ;;  %v1827_v57 = vand.u32 4294901760, %v925_v46 }
 0x113   :  { %v215_v12 = vadd.f32 %v214_v0, %v185_v11  ;;  %v1838_v0 = vsub.f32 %v926_v39, %v1825_v45  ;;  %v1848_v11 = vsub.f32 %v924_v50, %v1829_v3 }
 0x114   :  { %940 = vmatpush.msra.mxu2 %v1827_v57 }
 0x115   :  { %v245_v17 = vadd.f32 %v244_v5, %v215_v12  ;;  %v996_v12 = vand.u32 4294901760, %v1838_v0 }
 0x116   :  { %942 = vmatpush.msra.mxu2 %v1829_v3 }
 0x117   :  { %v304_v2 = vpop.f32.mrf.mxu1 }
 0x118   :  { %v153_v59 = vpop.f32.mrf.mxu0  ;;  %v219_v6 = vpop.f32.mrf.mxu2 }
 0x119   :  { %v189_v19 = vadd.f32 %v188_v1, %v153_v59  ;;  %v1841_v1 = vand.u32 4294901760, %v923_v51 }
 0x11a   :  { %v250_v62 = vpop.f32.mrf.mxu3 }
 0x11b   :  { %v220_v24 = vadd.f32 %v219_v6, %v189_v19  ;;  %v1845_v6 = vsub.f32 %v925_v46, %v1827_v57  ;;  %944 = vmatpush.msra.mxu2 %v1841_v1 }
 0x11d   :  { %v251_v34 = vadd.f32 %v250_v62, %v220_v24  ;;  %v984_v62 = vand.u32 4294901760, %v1832_v4 }
 0x11f   :  { %v308_v25 = vpop.f32.mrf.mxu1 }
 0x120   :  { %v277_v7 = vpop.f32.mrf.mxu0  ;;  %v345_v13 = vpop.f32.mrf.mxu2 }
 0x121   :  { %v278_v23 = vadd.f32 %v277_v7, %v245_v17  ;;  %v1855_v7 = vsub.f32 %v923_v51, %v1841_v1 }
 0x122   :  { %v384_v18 = vpop.f32.mrf.mxu3 }
 0x123   :  { %v305_v28 = vadd.f32 %v304_v2, %v278_v23  ;;  %v990_v2 = vand.u32 4294901760, %v1835_v61  ;;  %v985_v23 = vsub.f32 %v1832_v4, %v984_v62 }
 0x125   :  { %v346_v36 = vadd.f32 %v345_v13, %v305_v28  ;;  %v922_v13 = vld [vmem:[#allocation8 + $0x48] sm:$0xff]  ;;  %v991_v24 = vsub.f32 %v1835_v61, %v990_v2  ;;  %v1008_v28 = vand.u32 4294901760, %v1848_v11 }
 0x127   :  { %v444_v42 = vpop.f32.mrf.mxu1  ;;  %v385_v43 = vadd.f32 %v384_v18, %v346_v36  ;;  %v1002_v18 = vand.u32 4294901760, %v1845_v6 }
 0x128   :  { %v281_v29 = vpop.f32.mrf.mxu0  ;;  %v353_v30 = vpop.f32.mrf.mxu2 }
 0x129   :  { %v282_v41 = vadd.f32 %v281_v29, %v251_v34  ;;  %v986_v34 = vand.u32 4294901760, %v985_v23  ;;  %v1003_v36 = vsub.f32 %v1845_v6, %v1002_v18 }
 0x12a   :  { %v388_v35 = vpop.f32.mrf.mxu3 }
 0x12b   :  { %v309_v47 = vadd.f32 %v308_v25, %v282_v41  ;;  %v997_v25 = vsub.f32 %v1838_v0, %v996_v12  ;;  %v1014_v41 = vand.u32 4294901760, %v1855_v7  ;;  %987 = vmatpush.msra.mxu3 %v986_v34 }
 0x12d   :  { %v354_v55 = vadd.f32 %v353_v30, %v309_v47  ;;  %v1871_v30 = vand.u32 4294901760, %v922_v13  ;;  %v998_v47 = vand.u32 4294901760, %v997_v25 }
 0x12f   :  { %v389_v8 = vadd.f32 %v388_v35, %v354_v55  ;;  %v450_v14 = vpop.f32.mrf.mxu1  ;;  %v992_v35 = vand.u32 4294901760, %v991_v24  ;;  %v1015_v55 = vsub.f32 %v1855_v7, %v1014_v41  ;;  %946 = vmatpush.msra.mxu2 %v1871_v30 }
 0x130   :  { %v414_v48 = vpop.f32.mrf.mxu0  ;;  %v477_v49 = vpop.f32.mrf.mxu2 }
 0x131   :  { %v415_v53 = vadd.f32 %v414_v48, %v385_v43  ;;  %v1880_v43 = vsub.f32 %v922_v13, %v1871_v30  ;;  %v1009_v48 = vsub.f32 %v1848_v11, %v1008_v28  ;;  %993 = vmatpush.msra.mxu3 %v992_v35 }
 0x132   :  { %v504_v54 = vpop.f32.mrf.mxu3 }
 0x133   :  { %v445_v58 = vadd.f32 %v444_v42, %v415_v53  ;;  %v1020_v53 = vand.u32 4294901760, %v1880_v43  ;;  %999 = vmatpush.msra.mxu3 %v998_v47  ;;  %v914_v47 = vld [vmem:[#allocation8 + $0x8] sm:$0xff] }
 0x135   :  { %v478_v60 = vadd.f32 %v477_v49, %v445_v58 }
 0x137   :  { %v505_v9 = vadd.f32 %v504_v54, %v478_v60  ;;  %v1004_v54 = vand.u32 4294901760, %v1003_v36  ;;  %v1010_v60 = vand.u32 4294901760, %v1009_v48 }
 0x138   :  { %v419_v10 = vpop.f32.mrf.mxu0  ;;  %v481_v20 = vpop.f32.mrf.mxu2 }
 0x139   :  { %v515_v15 = vadd.f32 %v1346_v63, %v505_v9  ;;  %v420_v16 = vadd.f32 %v419_v10, %v389_v8  ;;  %1005 = vmatpush.msra.mxu3 %v1004_v54  ;;  %v1016_v8 = vand.u32 4294901760, %v1015_v55  ;;  %v921_v10 = vld [vmem:[#allocation8 + $0x40] sm:$0xff]  ;;  %v1978_v55 = vand.u32 4294901760, %v914_v47 }
 0x13a   :  { %v508_v26 = vpop.f32.mrf.mxu3 }
 0x13b   :  { %v517_v21 = vmax.f32 %v515_v15, 0.0  ;;  %v451_v22 = vadd.f32 %v450_v14, %v420_v16  ;;  %1011 = vmatpush.msra.mxu3 %v1010_v60  ;;  %v1907_v14 = vand.u32 4294901760, %v921_v10  ;;  %v920_v15 = vld [vmem:[#allocation8 + $0x38] sm:$0xff] }
 0x13d   :  { %v1817_v27 = vand.u32 4294901760, %v517_v21  ;;  %v482_v31 = vadd.f32 %v481_v20, %v451_v22  ;;  %1017 = vmatpush.msra.mxu3 %v1016_v8  ;;  %v1910_v16 = vsub.f32 %v921_v10, %v1907_v14  ;;  %v1912_v20 = vand.u32 4294901760, %v920_v15  ;;  %948 = vmatpush.msra.mxu2 %v1907_v14 }
 0x13f   :  { %v572_v32 = vsub.f32 %v517_v21, %v1817_v27  ;;  %v509_v33 = vadd.f32 %v508_v26, %v482_v31  ;;  %685 = vmatmul.f32.vlgmr.msrb.gmra.mxu1 %v1817_v27  ;;  %v919_v21 = vld [vmem:[#allocation8 + $0x30] sm:$0xff]  ;;  %v1026_v22 = vand.u32 4294901760, %v1910_v16  ;;  %v1918_v26 = vsub.f32 %v920_v15, %v1912_v20  ;;  %950 = vmatpush.msra.mxu2 %v1912_v20  ;;  %v918_v31 = vld [vmem:[#allocation8 + $0x28] sm:$0xff] }
 0x140   :  { %1147 = vmatpush.msrb.mxu1 %v1821_v40  ;;  %v1932_v38 = vand.u32 4294901760, %v918_v31 }
 0x141   :  { %v516_v52 = vadd.f32 %v1346_v63, %v509_v33  ;;  %743 = vmatmul.f32.vlgmr.msrb.gmra.mxu2 %v572_v32  ;;  %v573_v56 = vand.u32 4294901760, %v572_v32  ;;  %v1021_v63 = vsub.f32 %v1880_v43, %v1020_v53  ;;  %v1032_v33 = vand.u32 4294901760, %v1918_v26 }
 0x142   :  { %1149 = vmatpush.msrb.mxu1 %v1823_v44  ;;  %v1942_v51 = vsub.f32 %v918_v31, %v1932_v38 }
 0x143   :  { %v518_v5 = vmax.f32 %v516_v52, 0.0  ;;  %787 = vmatmul.f32.vlgmr.msrb.gmra.mxu3 %v573_v56  ;;  %v574_v59 = vsub.f32 %v572_v32, %v573_v56  ;;  %v1022_v9 = vand.u32 4294901760, %v1021_v63  ;;  %v1027_v32 = vsub.f32 %v1910_v16, %v1026_v22  ;;  %v917_v52 = vld [vmem:[#allocation8 + $0x20] sm:$0xff] }
 0x144   :  { %1151 = vmatpush.msrb.mxu1 %v1825_v45  ;;  %v1033_v46 = vsub.f32 %v1918_v26, %v1032_v33  ;;  %v1946_v56 = vand.u32 4294901760, %v917_v52  ;;  %v1044_v13 = vand.u32 4294901760, %v1942_v51 }
 0x145   :  { %v579_v17 = vand.u32 4294901760, %v518_v5  ;;  %v575_v19 = vand.u32 4294901760, %v574_v59  ;;  %1023 = vmatpush.msra.mxu3 %v1022_v9  ;;  %v1028_v39 = vand.u32 4294901760, %v1027_v32  ;;  %v1067_v9 = vsub.f32 %v914_v47, %v1978_v55 }
 0x146   :  { %1153 = vmatpush.msrb.mxu1 %v1827_v57  ;;  %v1045_v25 = vsub.f32 %v1942_v51, %v1044_v13 }
 0x147   :  { %576 = vmatmul.f32.vlgmr.msrb.gmra.mxu0 %v575_v19  ;;  %689 = vmatmul.f32.gmra.mxu1 %v579_v17  ;;  %v580_v29 = vsub.f32 %v518_v5, %v579_v17  ;;  %v1034_v5 = vand.u32 4294901760, %v1033_v46  ;;  %v1955_v19 = vsub.f32 %v917_v52, %v1946_v56  ;;  %v1068_v31 = vand.u32 4294901760, %v1067_v9 }
 0x148   :  { %1089 = vmatpush.msrb.mxu0 %v1832_v4  ;;  %1155 = vmatpush.msrb.mxu1 %v1829_v3 }
 0x149   :  { %748 = vmatmul.f32.gmra.mxu2 %v580_v29  ;;  %v581_v42 = vand.u32 4294901760, %v580_v29  ;;  %1029 = vmatpush.msra.mxu3 %v1028_v39  ;;  %v1050_v34 = vand.u32 4294901760, %v1955_v19  ;;  %v1069_v46 = vsub.f32 %v1067_v9, %v1068_v31 }
 0x14a   :  { %1092 = vmatpush.msrb.mxu0 %v1835_v61  ;;  %1157 = vmatpush.msrb.mxu1 %v1841_v1 }
 0x14b   :  { %793 = vmatmul.f32.gmra.mxu3 %v581_v42  ;;  %v582_v49 = vsub.f32 %v580_v29, %v581_v42  ;;  %v915_v29 = vld [vmem:[#allocation8 + $0x10] sm:$0xff]  ;;  %v1046_v42 = vand.u32 4294901760, %v1045_v25  ;;  %v1051_v48 = vsub.f32 %v1955_v19, %v1050_v34 }
 0x14c   :  { %1095 = vmatpush.msrb.mxu0 %v1838_v0  ;;  %1159 = vmatpush.msrb.mxu1 %v1871_v30  ;;  %v1968_v36 = vand.u32 4294901760, %v915_v29 }
 0x14d   :  { %v583_v58 = vand.u32 4294901760, %v582_v49  ;;  %1035 = vmatpush.msra.mxu3 %v1034_v5  ;;  %v1052_v60 = vand.u32 4294901760, %v1051_v48  ;;  %v1070_v5 = vand.u32 4294901760, %v1069_v46 }
 0x14e   :  { %1098 = vmatpush.msrb.mxu0 %v1845_v6  ;;  %1161 = vmatpush.msrb.mxu1 %v1907_v14  ;;  %v1061_v54 = vsub.f32 %v915_v29, %v1968_v36  ;;  %v1348_v29 = vld [vmem:[%s2046_s8] ss:$0 sm:$0xff] }
 0x14f   :  { %584 = vmatmul.f32.gmra.mxu0 %v583_v58  ;;  %903 = vmatmul.f32.vlgmr.msra.gmra.mxu1 %v1817_v27  ;;  %v913_v58 = vld [vmem:[#allocation8] sm:$0xff] }
 0x150   :  { %1101 = vmatpush.msrb.mxu0 %v1848_v11  ;;  %1163 = vmatpush.msrb.mxu1 %v1912_v20  ;;  %v1062_v8 = vand.u32 4294901760, %v1061_v54  ;;  %v963_v10 = vand.u32 4294901760, %v913_v58 }
 0x152   :  { %1104 = vmatpush.msrb.mxu0 %v1855_v7  ;;  %v1073_v32 = vsub.f32 %v913_v58, %v963_v10 }
 0x154   :  { %1107 = vmatpush.msrb.mxu0 %v1880_v43  ;;  %v1074_v52 = vand.u32 4294901760, %v1073_v32 }
 0x156   :  { %1110 = vmatpush.msrb.mxu0 %v1910_v16 }
 0x157   :  { %862 = vmatmul.f32.vlgmr.msra.gmra.mxu0 %v1817_v27  ;;  %907 = vmatmul.f32.gmra.mxu1 %v579_v17  ;;  %v1920_v27 = vand.u32 4294901760, %v919_v21 }
 0x158   :  { %1113 = vmatpush.msrb.mxu0 %v1918_v26 }
 0x159   :  { %v1930_v37 = vsub.f32 %v919_v21, %v1920_v27  ;;  %952 = vmatpush.msra.mxu2 %v1920_v27  ;;  %1165 = vmatpush.msrb.mxu1 %v1920_v27  ;;  %v1063_v21 = vsub.f32 %v1061_v54, %v1062_v8 }
 0x15b   :  { %v1038_v50 = vand.u32 4294901760, %v1930_v37  ;;  %954 = vmatpush.msra.mxu2 %v1932_v38  ;;  %1116 = vmatpush.msrb.mxu0 %v1930_v37  ;;  %v1064_v39 = vand.u32 4294901760, %v1063_v21 }
 0x15c   :  { %1167 = vmatpush.msrb.mxu1 %v1932_v38 }
 0x15d   :  { %v1039_v59 = vsub.f32 %v1930_v37, %v1038_v50  ;;  %1119 = vmatpush.msrb.mxu0 %v1942_v51  ;;  %956 = vmatpush.msra.mxu2 %v1946_v56 }
 0x15e   :  { %1169 = vmatpush.msrb.mxu1 %v1946_v56 }
 0x15f   :  { %866 = vmatmul.f32.gmra.mxu0 %v579_v17  ;;  %v916_v17 = vld [vmem:[#allocation8 + $0x18] sm:$0xff]  ;;  %v1040_v24 = vand.u32 4294901760, %v1039_v59  ;;  %v1075_v59 = vsub.f32 %v1073_v32, %v1074_v52 }
 0x160   :  { %v1957_v23 = vand.u32 4294901760, %v916_v17  ;;  %1122 = vmatpush.msrb.mxu0 %v1955_v19 }
 0x161   :  { %1041 = vmatpush.msra.mxu3 %v1040_v24 }
 0x162   :  { %v1966_v35 = vsub.f32 %v916_v17, %v1957_v23  ;;  %958 = vmatpush.msra.mxu2 %v1957_v23  ;;  %1171 = vmatpush.msrb.mxu1 %v1957_v23  ;;  %v1076_v17 = vand.u32 4294901760, %v1075_v59 }
 0x163   :  { %1047 = vmatpush.msra.mxu3 %v1046_v42 }
 0x164   :  { %v1056_v49 = vand.u32 4294901760, %v1966_v35  ;;  %960 = vmatpush.msra.mxu2 %v1968_v36  ;;  %1125 = vmatpush.msrb.mxu0 %v1966_v35 }
 0x165   :  { %1173 = vmatpush.msrb.mxu1 %v1968_v36  ;;  %1053 = vmatpush.msra.mxu3 %v1052_v60 }
 0x166   :  { %v1057_v63 = vsub.f32 %v1966_v35, %v1056_v49  ;;  %962 = vmatpush.msra.mxu2 %v1978_v55  ;;  %1128 = vmatpush.msrb.mxu0 %v1061_v54 }
 0x167   :  { %1175 = vmatpush.msrb.mxu1 %v1978_v55 }
 0x168   :  { %v1058_v15 = vand.u32 4294901760, %v1057_v63  ;;  %1131 = vmatpush.msrb.mxu0 %v1067_v9  ;;  %964 = vmatpush.msra.mxu2 %v963_v10 }
 0x169   :  { %1177 = vmatpush.msrb.mxu1 %v963_v10 }
 0x16a   :  { %1059 = vmatpush.msra.mxu3 %v1058_v15  ;;  %1194 = vmatpush.msrb.mxu2 %v984_v62 }
 0x16b   :  { %1134 = vmatpush.msrb.mxu0 %v1073_v32 }
 0x16c   :  { %1065 = vmatpush.msra.mxu3 %v1064_v39  ;;  %1198 = vmatpush.msrb.mxu2 %v990_v2 }
 0x16e   :  { %1071 = vmatpush.msra.mxu3 %v1070_v5  ;;  %1202 = vmatpush.msrb.mxu2 %v996_v12 }
 0x170   :  { %1206 = vmatpush.msrb.mxu2 %v1002_v18  ;;  %1077 = vmatpush.msra.mxu3 %v1076_v17 }
 0x172   :  { %1265 = vmatpush.msrb.mxu3 %v1821_v40  ;;  %1210 = vmatpush.msrb.mxu2 %v1008_v28 }
 0x174   :  { %1267 = vmatpush.msrb.mxu3 %v1823_v44  ;;  %1214 = vmatpush.msrb.mxu2 %v1014_v41  ;;  %v1347_v44 = vld [vmem:[%s2044_s6] ss:$0 sm:$0xff] }
 0x176   :  { %1269 = vmatpush.msrb.mxu3 %v1825_v45  ;;  %1218 = vmatpush.msrb.mxu2 %v1020_v53 }
 0x178   :  { %1271 = vmatpush.msrb.mxu3 %v1827_v57  ;;  %1222 = vmatpush.msrb.mxu2 %v1026_v22 }
 0x17a   :  { %1273 = vmatpush.msrb.mxu3 %v1829_v3  ;;  %1226 = vmatpush.msrb.mxu2 %v1032_v33 }
 0x17c   :  { %1275 = vmatpush.msrb.mxu3 %v1841_v1  ;;  %1230 = vmatpush.msrb.mxu2 %v1038_v50 }
 0x17e   :  { %1277 = vmatpush.msrb.mxu3 %v1871_v30  ;;  %1234 = vmatpush.msrb.mxu2 %v1044_v13 }
 0x180   :  { %1279 = vmatpush.msrb.mxu3 %v1907_v14  ;;  %1238 = vmatpush.msrb.mxu2 %v1050_v34 }
 0x182   :  { %1281 = vmatpush.msrb.mxu3 %v1912_v20  ;;  %1242 = vmatpush.msrb.mxu2 %v1056_v49 }
 0x184   :  { %1283 = vmatpush.msrb.mxu3 %v1920_v27  ;;  %1246 = vmatpush.msrb.mxu2 %v1062_v8 }
 0x186   :  { %1285 = vmatpush.msrb.mxu3 %v1932_v38  ;;  %1250 = vmatpush.msrb.mxu2 %v1068_v31 }
 0x188   :  { %1287 = vmatpush.msrb.mxu3 %v1946_v56  ;;  %1254 = vmatpush.msrb.mxu2 %v1074_v52 }
 0x18a   :  { %1289 = vmatpush.msrb.mxu3 %v1957_v23 }
 0x18c   :  { %1291 = vmatpush.msrb.mxu3 %v1968_v36 }
 0x18e   :  { %1293 = vmatpush.msrb.mxu3 %v1978_v55 }
 0x190   :  { %1295 = vmatpush.msrb.mxu3 %v963_v10 }
 0x1bc   :  { %v686_v40 = vpop.f32.mrf.mxu1 }
 0x1c4   :  { %v577_v45 = vpop.f32.mrf.mxu0  ;;  %v690_v3 = vpop.f32.mrf.mxu1 }
 0x1c5   :  { %v578_v57 = vadd.f32 %v1347_v44, %v577_v45  ;;  %v744_v61 = vpop.f32.mrf.mxu2 }
 0x1c6   :  { %v788_v11 = vpop.f32.mrf.mxu3 }
 0x1c7   :  { %v687_v4 = vadd.f32 %v686_v40, %v578_v57 }
 0x1c9   :  { %v745_v1 = vadd.f32 %v744_v61, %v687_v4 }
 0x1cb   :  { %v789_v62 = vadd.f32 %v788_v11, %v745_v1 }
 0x1cc   :  { %v585_v0 = vpop.f32.mrf.mxu0  ;;  %v904_v12 = vpop.f32.mrf.mxu1 }
 0x1cd   :  { %v586_v6 = vadd.f32 %v1347_v44, %v585_v0  ;;  %v749_v28 = vpop.f32.mrf.mxu2 }
 0x1ce   :  { %v794_v53 = vpop.f32.mrf.mxu3 }
 0x1cf   :  { %v691_v2 = vadd.f32 %v690_v3, %v586_v6 }
 0x1d1   :  { %v750_v30 = vadd.f32 %v749_v28, %v691_v2 }
 0x1d3   :  { %v795_v14 = vadd.f32 %v794_v53, %v750_v30 }
 0x1d4   :  { %v863_v7 = vpop.f32.mrf.mxu0  ;;  %v908_v27 = vpop.f32.mrf.mxu1 }
 0x1d5   :  { %v864_v18 = vadd.f32 %v863_v7, %v789_v62 }
 0x1d7   :  { %v905_v41 = vadd.f32 %v904_v12, %v864_v18 }
 0x1d9   :  { %v911_v43 = vmax.f32 %v905_v41, 0.0 }
 0x1db   :  { %v965_v16 = vand.u32 4294901760, %v911_v43 }
 0x1dc   :  { %v867_v20 = vpop.f32.mrf.mxu0 }
 0x1dd   :  { %v966_v22 = vsub.f32 %v911_v43, %v965_v16  ;;  %v868_v26 = vadd.f32 %v867_v20, %v795_v14  ;;  %1079 = vmatmul.f32.vlgmr.msra.gmra.mxu3 %v965_v16 }
 0x1df   :  { %v909_v33 = vadd.f32 %v908_v27, %v868_v26  ;;  %1137 = vmatmul.f32.vlgmr.msrb.gmra.mxu0 %v966_v22  ;;  %v967_v37 = vand.u32 4294901760, %v966_v22 }
 0x1e1   :  { %v912_v38 = vmax.f32 %v909_v33, 0.0  ;;  %1181 = vmatmul.f32.vlgmr.msrb.gmra.mxu1 %v967_v37  ;;  %v968_v50 = vsub.f32 %v966_v22, %v967_v37 }
 0x1e3   :  { %v973_v51 = vand.u32 4294901760, %v912_v38  ;;  %v969_v56 = vand.u32 4294901760, %v968_v50 }
 0x1e5   :  { %970 = vmatmul.f32.vlgmr.msra.gmra.mxu2 %v969_v56  ;;  %1083 = vmatmul.f32.gmra.mxu3 %v973_v51  ;;  %v974_v13 = vsub.f32 %v912_v38, %v973_v51 }
 0x1e7   :  { %1142 = vmatmul.f32.gmra.mxu0 %v974_v13  ;;  %v975_v19 = vand.u32 4294901760, %v974_v13 }
 0x1e9   :  { %1187 = vmatmul.f32.gmra.mxu1 %v975_v19  ;;  %v976_v23 = vsub.f32 %v974_v13, %v975_v19 }
 0x1eb   :  { %v977_v24 = vand.u32 4294901760, %v976_v23 }
 0x1ed   :  { %978 = vmatmul.f32.gmra.mxu2 %v977_v24  ;;  %1297 = vmatmul.f32.vlgmr.msrb.gmra.mxu3 %v965_v16 }
 0x1f5   :  { %1256 = vmatmul.f32.vlgmr.msrb.gmra.mxu2 %v965_v16  ;;  %1301 = vmatmul.f32.gmra.mxu3 %v973_v51 }
 0x1fd   :  { %1260 = vmatmul.f32.gmra.mxu2 %v973_v51 }
 0x25c   :  { %v1138_v47 = vpop.f32.mrf.mxu0 }
 0x25e   :  { %v1182_v55 = vpop.f32.mrf.mxu1 }
 0x260   :  { %v1080_v25 = vpop.f32.mrf.mxu3 }
 0x264   :  { %v1143_v10 = vpop.f32.mrf.mxu0 }
 0x266   :  { %v1188_v31 = vpop.f32.mrf.mxu1 }
 0x268   :  { %v971_v34 = vpop.f32.mrf.mxu2  ;;  %v1084_v36 = vpop.f32.mrf.mxu3 }
 0x269   :  { %v972_v35 = vadd.f32 %v1348_v29, %v971_v34 }
 0x26b   :  { %v1081_v42 = vadd.f32 %v1080_v25, %v972_v35 }
 0x26d   :  { %v1139_v54 = vadd.f32 %v1138_v47, %v1081_v42 }
 0x26f   :  { %v1183_v60 = vadd.f32 %v1182_v55, %v1139_v54 }
 0x270   :  { %v979_v48 = vpop.f32.mrf.mxu2  ;;  %v1298_v63 = vpop.f32.mrf.mxu3 }
 0x271   :  { %v980_v49 = vadd.f32 %v1348_v29, %v979_v48 }
 0x273   :  { %v1085_v58 = vadd.f32 %v1084_v36, %v980_v49 }
 0x275   :  { %v1144_v21 = vadd.f32 %v1143_v10, %v1085_v58 }
 0x277   :  { %v1189_v32 = vadd.f32 %v1188_v31, %v1144_v21 }
 0x278   :  { %v1257_v8 = vpop.f32.mrf.mxu2  ;;  %v1302_v52 = vpop.f32.mrf.mxu3 }
 0x279   :  { %v1258_v9 = vadd.f32 %v1257_v8, %v1183_v60 }
 0x27b   :  { %v1299_v15 = vadd.f32 %v1298_v63, %v1258_v9 }
 0x27d   :  { %1305 = vst [vmem:[#allocation10] sm:$0xff] %v1299_v15 }
 0x280   :  { %v1261_v39 = vpop.f32.mrf.mxu2 }
 0x281   :  { %v1262_v46 = vadd.f32 %v1261_v39, %v1189_v32 }
 0x283   :  { %v1303_v5 = vadd.f32 %v1302_v52, %v1262_v46 }
 0x285   :  { %1306 = vst [vmem:[#allocation10 + $0x8] sm:$0xff] %v1303_v5 }
 0x286   :  { %1310 = vsyncadd [#allocation4], 128  ;;  %s1313_s19 = sshll.u32 %s2047_s9, 4  ;;  %s1485_s20 = smov [#allocation10]   ;;  %s1314_s19 = int_to_ptr.hbm [resolvable:$true] %s1313_s19 }
 0x287   :  { %s1311_s21 = sshll.u32 %s1485_s20, 4  ;;  %s1312_s21 = int_to_ptr.vmem [resolvable:$true] %s1311_s21 }
 0x288   :  { %1319 = dma.vmem_to_hbm [thread:$0]  %s1312_s21, 128, %s1314_s19, [#allocation4], %s1478_s17, %s1478_s17, %s1479_s18  }
 0x289   :  { %1475 = dma.done.wait [#allocation4], 256  }
 0x28a   :  { %1476 = vsyncadd [#allocation4], 4294967040 }
 0x28b   :  { %1324 = vsyncpa [#allocation3], 1 }
 0x28c   :  { %1325 = vsyncpa [#allocation6], 1 }
 0x28d   :  { %1326 = vsyncpa [#allocation9], 1 }
 0x28e   :  { %1327 = vsyncpa [#allocation4], 1 }

</bundles_post_ra>
